<compile_context>
chip_gen: v5e
topology: v5e:2x2
jax: 0.10.0
libtpu: 0.0.40
codegen_flags: <defaults>
</compile_context>

<pallas_src>
from typing import NamedTuple

import jax
import jax.numpy as jnp
from jax.experimental import pallas as pl
from jax.experimental.pallas import tpu as pltpu


def _round_up(n, m):
    return ((n + m - 1) // m) * m


# --------------------------------------------------------------------------- #
# Kernel
# --------------------------------------------------------------------------- #
def mlp4_kernel(x_ref, w_ref, b_ref, o_ref):
    """Fused 4-layer MLP on one activation tile.

    x_ref : (TB, K)       activation tile, K = inp_dim rounded up to 8 (K <= D)
    w_ref : (4, D, D)     stacked weights, already (in_dim, out_dim) layout
    b_ref : (4, 1, D)     stacked biases (f32)
    o_ref : (TB, D)       lane-dense (D multiple of 128) output tile
    """
    k = x_ref.shape[-1]
    cdt = w_ref.dtype  # compute dtype of the MXU operands (f32 or bf16)

    # Layer 0: contract the unpadded activation against the first k weight rows
    # (rows k..D of the padded weight stack are zero anyway).
    x = jnp.dot(x_ref[...].astype(cdt), w_ref[0, :k, :],
                preferred_element_type=jnp.float32)
    x = jnp.maximum(x + b_ref[0], 0.0)

    # Layers 1..3, fully unrolled: 3 more MXU matmuls + VPU bias/ReLU in VMEM.
    for i in range(1, 4):
        x = jnp.dot(x.astype(cdt), w_ref[i],
                    preferred_element_type=jnp.float32)
        x = jnp.maximum(x + b_ref[i], 0.0)

    o_ref[...] = x.astype(o_ref.dtype)


# --------------------------------------------------------------------------- #
# One-time parameter packing (hoisted out of the per-call forward path)
# --------------------------------------------------------------------------- #
class PackedParams(NamedTuple):
    w_stack: jax.Array   # (4, d_pad, d_pad), (in, out) layout, zero padded
    b_stack: jax.Array   # (4, 1, d_pad), f32
    inp_dim: int
    out_dim: int
    d_pad: int


def prepare_params(params, inp_dim, out_dim, compute_dtype=jnp.float32):
    """Pack the 4 (weight (out,in), bias (out,)) pairs once.

    compute_dtype=jnp.bfloat16 enables full-rate bf16 MXU matmuls (f32 accum);
    expect ~1e-2 relative error vs the f32 reference in that case.
    """
    assert inp_dim == out_dim, "TestNN forward only valid when inp_dim == out_dim"
    d_pad = _round_up(max(inp_dim, out_dim), 128)     # lane-dense feature dim

    w_stack = jnp.zeros((4, d_pad, d_pad), compute_dtype)
    b_stack = jnp.zeros((4, 1, d_pad), jnp.float32)
    for i, (w, b) in enumerate(params):
        w = jnp.asarray(w, jnp.float32)
        b = jnp.asarray(b, jnp.float32)
        # pre-transpose host-side to (in_dim, out_dim); padded rows/cols stay 0,
        # and ReLU(0) = 0 keeps the padded lanes exactly 0 through all 4 layers.
        w_stack = w_stack.at[i, :w.shape[1], :w.shape[0]].set(
            w.T.astype(compute_dtype))
        b_stack = b_stack.at[i, 0, :b.shape[0]].set(b)
    return PackedParams(w_stack, b_stack, inp_dim, out_dim, d_pad)


# --------------------------------------------------------------------------- #
# Forward
# --------------------------------------------------------------------------- #
def _choose_batch_tiling(batch, max_tile=2048):
    """Balanced batch tiling; >=2 grid steps when possible (v7x: 2 TCs)."""
    rows = _round_up(batch, 8)
    n_steps = pl.cdiv(rows, max_tile)
    if rows >= 16:
        n_steps = max(n_steps, 2)          # let Mosaic shard batch across cores
    tb = _round_up(pl.cdiv(rows, n_steps), 8)
    n_steps = pl.cdiv(rows, tb)
    return tb, tb * n_steps


def test_nn_forward(x, packed: PackedParams):
    """x: (batch, inp_dim).  packed: output of prepare_params (call once)."""
    batch, d_in = x.shape
    assert d_in == packed.inp_dim

    k_pad = _round_up(packed.inp_dim, 8)   # sublane-aligned activation width
    tb, batch_pad = _choose_batch_tiling(batch)

    if (batch, d_in) != (batch_pad, k_pad):
        x_in = jnp.zeros((batch_pad, k_pad), x.dtype).at[:batch, :d_in].set(x)
    else:
        x_in = x                            # no per-call host prep at all

    d_pad = packed.d_pad
    out = pl.pallas_call(
        mlp4_kernel,
        out_shape=jax.ShapeDtypeStruct((batch_pad, d_pad), jnp.float32),
        grid_spec=pltpu.PrefetchScalarGridSpec(
            num_scalar_prefetch=0,
            grid=(batch_pad // tb,),
            in_specs=[
                # activations: full (narrow) last dim => contiguous DMA
                pl.BlockSpec((tb, k_pad), lambda i: (i, 0)),
                # weights / biases: VMEM-resident across the whole grid
                pl.BlockSpec((4, d_pad, d_pad), lambda i: (0, 0, 0)),
                pl.BlockSpec((4, 1, d_pad), lambda i: (0, 0, 0)),
            ],
            out_specs=pl.BlockSpec((tb, d_pad), lambda i: (i, 0)),
        ),
        compiler_params=pltpu.CompilerParams(
            dimension_semantics=("parallel",)),
    )(x_in, packed.w_stack, packed.b_stack)

    return out[:batch, :packed.out_dim]


# --------------------------------------------------------------------------- #
# Init / reference / main
# --------------------------------------------------------------------------- #
def init_params(key, inp_dim, out_dim, n_layers=4):
    """Deterministic PyTorch-like init: U(-1/sqrt(fan_in), 1/sqrt(fan_in))."""
    params = []
    for i in range(n_layers):
        fan_in = inp_dim if i == 0 else out_dim
        bound = 1.0 / (fan_in ** 0.5)
        key, kw, kb = jax.random.split(key, 3)
        w = jax.random.uniform(kw, (out_dim, fan_in), jnp.float32,
                               minval=-bound, maxval=bound)
        b = jax.random.uniform(kb, (out_dim,), jnp.float32,
                               minval=-bound, maxval=bound)
        params.append((w, b))
    return params


def reference_forward(x, params):
    """Pure-JAX reference for sanity checking."""
    for w, b in params:
        x = jnp.maximum(x @ w.T + b, 0.0)
    return x


if __name__ == "__main__":
    inp_dim = 32
    out_dim = 32      # must equal inp_dim for this module's forward to be valid
    batch = 8

    key = jax.random.PRNGKey(0)
    key, kx = jax.random.split(key)
    x = jax.random.normal(kx, (batch, inp_dim), jnp.float32)
    params = init_params(key, inp_dim, out_dim)

    # One-time prep (weights are constants): done outside the forward path.
    packed = prepare_params(params, inp_dim, out_dim)  # compute_dtype=f32

    out = test_nn_forward(x, packed)
    out = jax.block_until_ready(out)

    ref = reference_forward(x, params)
    assert out.shape == (batch, out_dim)
    assert jnp.allclose(out, ref, atol=1e-5, rtol=1e-5), "mismatch vs reference"

    print("KERNEL_OK")
</pallas_src>

<mosaic_0001>
module attributes {stable_mosaic.version = 11 : i64} {
  func.func @mlp4_kernel(%arg0: i32, %arg1: memref<8x32xf32, #tpu.memory_space<vmem>>, %arg2: memref<4x128x128xf32, #tpu.memory_space<vmem>>, %arg3: memref<4x1x128xf32, #tpu.memory_space<vmem>>, %arg4: memref<8x128xf32, #tpu.memory_space<vmem>>) attributes {dimension_semantics = [#tpu.dimension_semantics<parallel>], iteration_bounds = array<i64: 1>, scalar_prefetch = 0 : i64, scratch_operands = 0 : i64, tpu.core_type = #tpu.core_type<tc>, window_params = [{transform_indices = @transform_0, window_bounds = array<i64: 8, 32>}, {pipeline_mode = #tpu.pipeline_mode<synchronous>, transform_indices = @transform_1, window_bounds = array<i64: 4, 128, 128>}, {pipeline_mode = #tpu.pipeline_mode<synchronous>, transform_indices = @transform_2, window_bounds = array<i64: 4, 1, 128>}, {transform_indices = @transform_3, window_bounds = array<i64: 8, 128>}]} {
    %c0 = arith.constant 0 : index
    %c0_0 = arith.constant 0 : index
    %0 = vector.load %arg1[%c0, %c0_0] : memref<8x32xf32, #tpu.memory_space<vmem>>, vector<8x32xf32>
    %c0_1 = arith.constant 0 : index
    %c0_2 = arith.constant 0 : index
    %c0_3 = arith.constant 0 : index
    %1 = vector.load %arg2[%c0_1, %c0_2, %c0_3] : memref<4x128x128xf32, #tpu.memory_space<vmem>>, vector<1x32x128xf32>
    %2 = vector.shape_cast %1 : vector<1x32x128xf32> to vector<32x128xf32>
    %cst = arith.constant dense<0.000000e+00> : vector<8x128xf32>
    %3 = tpu.matmul %0, %2, %cst {dimension_numbers = #tpu.dot_dimension_numbers<[1], [0], [0], [1], [0, 0, 1, 1], [], []>} : vector<8x32xf32>, vector<32x128xf32>, vector<8x128xf32> -> vector<8x128xf32>
    %c0_4 = arith.constant 0 : index
    %c0_5 = arith.constant 0 : index
    %c0_6 = arith.constant 0 : index
    %4 = vector.load %arg3[%c0_4, %c0_5, %c0_6] : memref<4x1x128xf32, #tpu.memory_space<vmem>>, vector<1x1x128xf32>
    %5 = vector.shape_cast %4 : vector<1x1x128xf32> to vector<1x128xf32>
    %6 = vector.broadcast %5 : vector<1x128xf32> to vector<8x128xf32>
    %7 = arith.addf %3, %6 : vector<8x128xf32>
    %cst_7 = arith.constant 0.000000e+00 : f32
    %8 = vector.broadcast %cst_7 : f32 to vector<8x128xf32>
    %9 = arith.maximumf %7, %8 : vector<8x128xf32>
    %c1 = arith.constant 1 : index
    %c0_8 = arith.constant 0 : index
    %c0_9 = arith.constant 0 : index
    %10 = vector.load %arg2[%c1, %c0_8, %c0_9] : memref<4x128x128xf32, #tpu.memory_space<vmem>>, vector<1x128x128xf32>
    %11 = vector.shape_cast %10 : vector<1x128x128xf32> to vector<128x128xf32>
    %cst_10 = arith.constant dense<0.000000e+00> : vector<8x128xf32>
    %12 = tpu.matmul %9, %11, %cst_10 {dimension_numbers = #tpu.dot_dimension_numbers<[1], [0], [0], [1], [0, 0, 1, 1], [], []>} : vector<8x128xf32>, vector<128x128xf32>, vector<8x128xf32> -> vector<8x128xf32>
    %c1_11 = arith.constant 1 : index
    %c0_12 = arith.constant 0 : index
    %c0_13 = arith.constant 0 : index
    %13 = vector.load %arg3[%c1_11, %c0_12, %c0_13] : memref<4x1x128xf32, #tpu.memory_space<vmem>>, vector<1x1x128xf32>
    %14 = vector.shape_cast %13 : vector<1x1x128xf32> to vector<1x128xf32>
    %15 = vector.broadcast %14 : vector<1x128xf32> to vector<8x128xf32>
    %16 = arith.addf %12, %15 : vector<8x128xf32>
    %cst_14 = arith.constant 0.000000e+00 : f32
    %17 = vector.broadcast %cst_14 : f32 to vector<8x128xf32>
    %18 = arith.maximumf %16, %17 : vector<8x128xf32>
    %c2 = arith.constant 2 : index
    %c0_15 = arith.constant 0 : index
    %c0_16 = arith.constant 0 : index
    %19 = vector.load %arg2[%c2, %c0_15, %c0_16] : memref<4x128x128xf32, #tpu.memory_space<vmem>>, vector<1x128x128xf32>
    %20 = vector.shape_cast %19 : vector<1x128x128xf32> to vector<128x128xf32>
    %cst_17 = arith.constant dense<0.000000e+00> : vector<8x128xf32>
    %21 = tpu.matmul %18, %20, %cst_17 {dimension_numbers = #tpu.dot_dimension_numbers<[1], [0], [0], [1], [0, 0, 1, 1], [], []>} : vector<8x128xf32>, vector<128x128xf32>, vector<8x128xf32> -> vector<8x128xf32>
    %c2_18 = arith.constant 2 : index
    %c0_19 = arith.constant 0 : index
    %c0_20 = arith.constant 0 : index
    %22 = vector.load %arg3[%c2_18, %c0_19, %c0_20] : memref<4x1x128xf32, #tpu.memory_space<vmem>>, vector<1x1x128xf32>
    %23 = vector.shape_cast %22 : vector<1x1x128xf32> to vector<1x128xf32>
    %24 = vector.broadcast %23 : vector<1x128xf32> to vector<8x128xf32>
    %25 = arith.addf %21, %24 : vector<8x128xf32>
    %cst_21 = arith.constant 0.000000e+00 : f32
    %26 = vector.broadcast %cst_21 : f32 to vector<8x128xf32>
    %27 = arith.maximumf %25, %26 : vector<8x128xf32>
    %c3 = arith.constant 3 : index
    %c0_22 = arith.constant 0 : index
    %c0_23 = arith.constant 0 : index
    %28 = vector.load %arg2[%c3, %c0_22, %c0_23] : memref<4x128x128xf32, #tpu.memory_space<vmem>>, vector<1x128x128xf32>
    %29 = vector.shape_cast %28 : vector<1x128x128xf32> to vector<128x128xf32>
    %cst_24 = arith.constant dense<0.000000e+00> : vector<8x128xf32>
    %30 = tpu.matmul %27, %29, %cst_24 {dimension_numbers = #tpu.dot_dimension_numbers<[1], [0], [0], [1], [0, 0, 1, 1], [], []>} : vector<8x128xf32>, vector<128x128xf32>, vector<8x128xf32> -> vector<8x128xf32>
    %c3_25 = arith.constant 3 : index
    %c0_26 = arith.constant 0 : index
    %c0_27 = arith.constant 0 : index
    %31 = vector.load %arg3[%c3_25, %c0_26, %c0_27] : memref<4x1x128xf32, #tpu.memory_space<vmem>>, vector<1x1x128xf32>
    %32 = vector.shape_cast %31 : vector<1x1x128xf32> to vector<1x128xf32>
    %33 = vector.broadcast %32 : vector<1x128xf32> to vector<8x128xf32>
    %34 = arith.addf %30, %33 : vector<8x128xf32>
    %cst_28 = arith.constant 0.000000e+00 : f32
    %35 = vector.broadcast %cst_28 : f32 to vector<8x128xf32>
    %36 = arith.maximumf %34, %35 : vector<8x128xf32>
    %c0_29 = arith.constant 0 : index
    %c0_30 = arith.constant 0 : index
    %37 = vector.load %arg4[%c0_29, %c0_30] : memref<8x128xf32, #tpu.memory_space<vmem>>, vector<8x128xf32>
    tpu.vector_store %arg4[%c0_29, %c0_30], %36 {strides = array<i32>} : memref<8x128xf32, #tpu.memory_space<vmem>>, vector<8x128xf32>,
    return
  }
  func.func @transform_0(%arg0: i32) -> (i32, i32) {
    %c0_i32 = arith.constant 0 : i32
    %c0_i32_0 = arith.constant 0 : i32
    return %arg0, %c0_i32 : i32, i32
  }
  func.func @transform_1(%arg0: i32) -> (i32, i32, i32) {
    %c0_i32 = arith.constant 0 : i32
    %c0_i32_0 = arith.constant 0 : i32
    %c0_i32_1 = arith.constant 0 : i32
    %c0_i32_2 = arith.constant 0 : i32
    return %c0_i32, %c0_i32_0, %c0_i32_1 : i32, i32, i32
  }
  func.func @transform_2(%arg0: i32) -> (i32, i32, i32) {
    %c0_i32 = arith.constant 0 : i32
    %c0_i32_0 = arith.constant 0 : i32
    %c0_i32_1 = arith.constant 0 : i32
    %c0_i32_2 = arith.constant 0 : i32
    return %c0_i32, %c0_i32_0, %c0_i32_1 : i32, i32, i32
  }
  func.func @transform_3(%arg0: i32) -> (i32, i32) {
    %c0_i32 = arith.constant 0 : i32
    %c0_i32_0 = arith.constant 0 : i32
    return %arg0, %c0_i32 : i32, i32
  }
}

</mosaic_0001>

<bundles_post_ra>
// kernel: tpu_custom_call.1
= control target key start
LH: loop header
LB: loop body
LE: loop exit
PB: predicated region body
PF: predicated region fallthrough
CT: control target
= control target key end

     0   :  { %8 = vsyncpa [#allocation3], 0  ;;  %s397_s0 = inlined_call_operand.hbm [shape: f32[8,32], index: 0, kind: input, shape index: {}]   ;;  %s398_s1 = inlined_call_operand.hbm [shape: f32[4,128,128], index: 1, kind: input, shape index: {}]   ;;  %s399_s2 = inlined_call_operand.hbm [shape: f32[4,1,128], index: 2, kind: input, shape index: {}]   ;;  %s400_s3 = inlined_call_operand.hbm [shape: f32[8,128], index: 3, kind: output, shape index: {}]  }
   0x1   :  { %9 = vsyncpa [#allocation6], 0  ;;  %s26_s14 = sshll.u32 %s398_s1, 4  ;;  %s27_s14 = int_to_ptr.hbm [resolvable:$true] %s26_s14 }
   0x2   :  { %10 = vsyncpa [#allocation4], 0  ;;  %s357_s15 = smov [#allocation5]   ;;  %s16_s19 = sshll.u32 %s397_s0, 4  ;;  %s17_s19 = int_to_ptr.hbm [resolvable:$true] %s16_s19 }
   0x3   :  { %s28_s16 = sshll.u32 %s357_s15, 4  ;;  %s358_s20 = smov 128   ;;  %s29_s16 = int_to_ptr.vmem [resolvable:$true] %s28_s16 }
   0x4   :  { %s359_s21 = smov 8   ;;  %s360_s22 = smov [#allocation2]  }
   0x5   :  { %34 = dma.hbm_to_vmem [thread:$0]  %s27_s14, 8192, %s29_s16, [#allocation6], %s358_s20, %s358_s20, %s359_s21  }
   0x6   :  { %s18_s23 = sshll.u32 %s360_s22, 4  ;;  %s39_s26 = sshll.u32 %s399_s2, 4  ;;  %s19_s23 = int_to_ptr.vmem [resolvable:$true] %s18_s23  ;;  %s40_s26 = int_to_ptr.hbm [resolvable:$true] %s39_s26 }
   0x7   :  { %21 = dma.hbm_to_vmem [thread:$0]  %s17_s19, 128, %s19_s23, [#allocation3]  }
   0x8   :  { %s361_s1 = smov [#allocation7]   ;;  %s362_s28 = smov 16  }
   0x9   :  { %s41_s27 = sshll.u32 %s361_s1, 4  ;;  %s363_s29 = smov 1   ;;  %s42_s27 = int_to_ptr.vmem [resolvable:$true] %s41_s27 }
   0xa   :  { %47 = dma.hbm_to_vmem [thread:$0]  %s40_s26, 64, %s42_s27, [#allocation6], %s362_s28, %s362_s28, %s363_s29  }
   0xb   :  { %351 = dma.done.wait [#allocation3], 128  }
   0xc   :  { %352 = vsyncadd [#allocation3], 4294967168 }
   0xd   :  { %353 = dma.done.wait [#allocation6], 8256  }
   0xe   :  { %354 = vsyncadd [#allocation6], 4294959040  ;;  %v64_v0 = vld [vmem:[#allocation5 + $0x18] sm:$0xff]  ;;  %v63_v1 = vld [vmem:[#allocation5 + $0x10] sm:$0xff]  ;;  %vm69_vm0 = vcmask 261120   ;;  %s364_s0 = smov [#allocation8]  }
   0xf   :  { %85 = vmatpush.msra.mxu0 %v64_v0  ;;  %v110_v2 = vld [vmem:[#allocation5 + $0xf8] sm:$0xff]  ;;  %v62_v3 = vld [vmem:[#allocation5 + $0x8] sm:$0xff]  ;;  %v109_v4 = vld [vmem:[#allocation5 + $0xf0] sm:$0xff]  ;;  %s229_s2 = sshll.u32 %s364_s0, 4  ;;  %s231_s5 = sshll.u32 %s400_s3, 4  ;;  %s230_s2 = int_to_ptr.vmem [resolvable:$true] %s229_s2  ;;  %s232_s5 = int_to_ptr.hbm [resolvable:$true] %s231_s5 }
  0x10   :  { %116 = vmatpush.msra.mxu1 %v110_v2  ;;  %v108_v5 = vld [vmem:[#allocation5 + $0xe8] sm:$0xff]  ;;  %v61_v6 = vld [vmem:[#allocation5] sm:$0xff]  ;;  %v60_v7 = vld [vmem:[#allocation2] sm:$0xff] }
  0x11   :  { %86 = vmatpush.msra.mxu0 %v63_v1  ;;  %v107_v8 = vld [vmem:[#allocation5 + $0xe0] sm:$0xff]  ;;  %v106_v9 = vld [vmem:[#allocation5 + $0xd8] sm:$0xff]  ;;  %v105_v10 = vld [vmem:[#allocation5 + $0xd0] sm:$0xff] }
  0x12   :  { %117 = vmatpush.msra.mxu1 %v109_v4  ;;  %v104_v11 = vld [vmem:[#allocation5 + $0xc8] sm:$0xff]  ;;  %v103_v12 = vld [vmem:[#allocation5 + $0xc0] sm:$0xff]  ;;  %v102_v13 = vld [vmem:[#allocation5 + $0xb8] sm:$0xff] }
  0x13   :  { %87 = vmatpush.msra.mxu0 %v62_v3  ;;  %v101_v14 = vld [vmem:[#allocation5 + $0xb0] sm:$0xff]  ;;  %v100_v15 = vld [vmem:[#allocation5 + $0xa8] sm:$0xff]  ;;  %v99_v16 = vld [vmem:[#allocation5 + $0xa0] sm:$0xff] }
  0x14   :  { %118 = vmatpush.msra.mxu1 %v108_v5  ;;  %v98_v17 = vld [vmem:[#allocation5 + $0x98] sm:$0xff]  ;;  %v97_v18 = vld [vmem:[#allocation5 + $0x90] sm:$0xff]  ;;  %v96_v19 = vld [vmem:[#allocation5 + $0x88] sm:$0xff] }
  0x15   :  { %88 = vmatpush.msra.mxu0 %v61_v6  ;;  %v95_v20 = vld [vmem:[#allocation5 + $0x80] sm:$0xff]  ;;  %v153_v21 = vld [vmem:[#allocation5 + $0x178] sm:$0xff]  ;;  %v152_v22 = vld [vmem:[#allocation5 + $0x170] sm:$0xff] }
  0x16   :  { %242 = vmatmul.msk.f32.vlgmr.msra.gmra.mxu0 %vm69_vm0, %v60_v7  ;;  %119 = vmatpush.msra.mxu1 %v107_v8  ;;  %v151_v23 = vld [vmem:[#allocation5 + $0x168] sm:$0xff]  ;;  %v150_v24 = vld [vmem:[#allocation5 + $0x160] sm:$0xff]  ;;  %v149_v25 = vld [vmem:[#allocation5 + $0x158] sm:$0xff] }
  0x17   :  { %159 = vmatpush.msra.mxu2 %v153_v21  ;;  %v148_v26 = vld [vmem:[#allocation5 + $0x150] sm:$0xff]  ;;  %v147_v27 = vld [vmem:[#allocation5 + $0x148] sm:$0xff]  ;;  %v146_v28 = vld [vmem:[#allocation5 + $0x140] sm:$0xff] }
  0x18   :  { %120 = vmatpush.msra.mxu1 %v106_v9  ;;  %v145_v29 = vld [vmem:[#allocation5 + $0x138] sm:$0xff]  ;;  %v144_v30 = vld [vmem:[#allocation5 + $0x130] sm:$0xff]  ;;  %v143_v31 = vld [vmem:[#allocation5 + $0x128] sm:$0xff] }
  0x19   :  { %160 = vmatpush.msra.mxu2 %v152_v22  ;;  %v142_v32 = vld [vmem:[#allocation5 + $0x120] sm:$0xff]  ;;  %v141_v33 = vld [vmem:[#allocation5 + $0x118] sm:$0xff]  ;;  %v140_v38 = vld [vmem:[#allocation5 + $0x110] sm:$0xff] }
  0x1a   :  { %121 = vmatpush.msra.mxu1 %v105_v10  ;;  %v251_v34 = vld [vmem:[#allocation7] ss:$0 sm:$0xff]  ;;  %v139_v39 = vld [vmem:[#allocation5 + $0x108] sm:$0xff]  ;;  %v196_v41 = vld [vmem:[#allocation5 + $0x1f8] sm:$0xff] }
  0x1b   :  { %161 = vmatpush.msra.mxu2 %v151_v23  ;;  %v138_v40 = vld [vmem:[#allocation5 + $0x100] sm:$0xff]  ;;  %v195_v42 = vld [vmem:[#allocation5 + $0x1f0] sm:$0xff]  ;;  %202 = vmatpush.msra.mxu3 %v196_v41  ;;  %v194_v43 = vld [vmem:[#allocation5 + $0x1e8] sm:$0xff] }
  0x1c   :  { %122 = vmatpush.msra.mxu1 %v104_v11  ;;  %v193_v44 = vld [vmem:[#allocation5 + $0x1e0] sm:$0xff]  ;;  %v192_v45 = vld [vmem:[#allocation5 + $0x1d8] sm:$0xff]  ;;  %v191_v46 = vld [vmem:[#allocation5 + $0x1d0] sm:$0xff] }
  0x1d   :  { %162 = vmatpush.msra.mxu2 %v150_v24  ;;  %203 = vmatpush.msra.mxu3 %v195_v42  ;;  %v190_v47 = vld [vmem:[#allocation5 + $0x1c8] sm:$0xff]  ;;  %v189_v48 = vld [vmem:[#allocation5 + $0x1c0] sm:$0xff]  ;;  %v188_v49 = vld [vmem:[#allocation5 + $0x1b8] sm:$0xff] }
  0x1e   :  { %123 = vmatpush.msra.mxu1 %v103_v12  ;;  %v187_v50 = vld [vmem:[#allocation5 + $0x1b0] sm:$0xff]  ;;  %v186_v51 = vld [vmem:[#allocation5 + $0x1a8] sm:$0xff]  ;;  %v185_v52 = vld [vmem:[#allocation5 + $0x1a0] sm:$0xff] }
  0x1f   :  { %163 = vmatpush.msra.mxu2 %v149_v25  ;;  %204 = vmatpush.msra.mxu3 %v194_v43  ;;  %v184_v53 = vld [vmem:[#allocation5 + $0x198] sm:$0xff]  ;;  %v252_v54 = vld [vmem:[#allocation7 + $0x1] ss:$0 sm:$0xff]  ;;  %v183_v58 = vld [vmem:[#allocation5 + $0x190] sm:$0xff] }
  0x20   :  { %124 = vmatpush.msra.mxu1 %v102_v13  ;;  %v182_v59 = vld [vmem:[#allocation5 + $0x188] sm:$0xff]  ;;  %v181_v60 = vld [vmem:[#allocation5 + $0x180] sm:$0xff] }
  0x21   :  { %164 = vmatpush.msra.mxu2 %v148_v26  ;;  %205 = vmatpush.msra.mxu3 %v193_v44  ;;  %v253_v61 = vld [vmem:[#allocation7 + $0x2] ss:$0 sm:$0xff]  ;;  %v254_v1 = vld [vmem:[#allocation7 + $0x3] ss:$0 sm:$0xff] }
  0x22   :  { %125 = vmatpush.msra.mxu1 %v101_v14 }
  0x23   :  { %165 = vmatpush.msra.mxu2 %v147_v27  ;;  %206 = vmatpush.msra.mxu3 %v192_v45 }
  0x24   :  { %126 = vmatpush.msra.mxu1 %v100_v15 }
  0x25   :  { %166 = vmatpush.msra.mxu2 %v146_v28  ;;  %207 = vmatpush.msra.mxu3 %v191_v46 }
  0x26   :  { %127 = vmatpush.msra.mxu1 %v99_v16 }
  0x27   :  { %167 = vmatpush.msra.mxu2 %v145_v29  ;;  %208 = vmatpush.msra.mxu3 %v190_v47 }
  0x28   :  { %128 = vmatpush.msra.mxu1 %v98_v17 }
  0x29   :  { %168 = vmatpush.msra.mxu2 %v144_v30  ;;  %209 = vmatpush.msra.mxu3 %v189_v48 }
  0x2a   :  { %129 = vmatpush.msra.mxu1 %v97_v18 }
  0x2b   :  { %169 = vmatpush.msra.mxu2 %v143_v31  ;;  %210 = vmatpush.msra.mxu3 %v188_v49 }
  0x2c   :  { %130 = vmatpush.msra.mxu1 %v96_v19 }
  0x2d   :  { %170 = vmatpush.msra.mxu2 %v142_v32  ;;  %211 = vmatpush.msra.mxu3 %v187_v50 }
  0x2e   :  { %131 = vmatpush.msra.mxu1 %v95_v20 }
  0x2f   :  { %171 = vmatpush.msra.mxu2 %v141_v33  ;;  %212 = vmatpush.msra.mxu3 %v186_v51 }
  0x31   :  { %172 = vmatpush.msra.mxu2 %v140_v38  ;;  %213 = vmatpush.msra.mxu3 %v185_v52 }
  0x33   :  { %173 = vmatpush.msra.mxu2 %v139_v39  ;;  %214 = vmatpush.msra.mxu3 %v184_v53 }
  0x35   :  { %174 = vmatpush.msra.mxu2 %v138_v40  ;;  %215 = vmatpush.msra.mxu3 %v183_v58 }
  0x37   :  { %216 = vmatpush.msra.mxu3 %v182_v59 }
  0x39   :  { %217 = vmatpush.msra.mxu3 %v181_v60 }
  0x93   :  { %v90_v35 = vpop.f32.mrf.mxu0 }
  0x94   :  { %v91_v36 = vadd.f32 %v251_v34, %v90_v35 }
  0x96   :  { %v93_v37 = vmax.f32 %v91_v36, 0.0 }
  0x98   :  { %132 = vmatmul.f32.vlgmr.msra.gmra.mxu1 %v93_v37 }
 0x115   :  { %v133_v55 = vpop.f32.mrf.mxu1 }
 0x116   :  { %v134_v56 = vadd.f32 %v252_v54, %v133_v55 }
 0x118   :  { %v136_v57 = vmax.f32 %v134_v56, 0.0 }
 0x11a   :  { %175 = vmatmul.f32.vlgmr.msra.gmra.mxu2 %v136_v57 }
 0x19d   :  { %v176_v62 = vpop.f32.mrf.mxu2 }
 0x19e   :  { %v177_v63 = vadd.f32 %v253_v61, %v176_v62 }
 0x1a0   :  { %v179_v0 = vmax.f32 %v177_v63, 0.0 }
 0x1a2   :  { %218 = vmatmul.f32.vlgmr.msra.gmra.mxu3 %v179_v0 }
 0x225   :  { %v219_v2 = vpop.f32.mrf.mxu3 }
 0x226   :  { %v220_v3 = vadd.f32 %v254_v1, %v219_v2 }
 0x228   :  { %v222_v4 = vmax.f32 %v220_v3, 0.0 }
 0x22a   :  { %223 = vst [vmem:[#allocation8] sm:$0xff] %v222_v4 }
 0x22b   :  { %234 = dma.vmem_to_hbm [thread:$0]  %s230_s2, 128, %s232_s5, [#allocation4]  }
 0x22c   :  { %355 = dma.done.wait [#allocation4], 128  }
 0x22d   :  { %356 = vsyncadd [#allocation4], 4294967168 }
 0x22e   :  { %239 = vsyncpa [#allocation3], 1 }
 0x22f   :  { %240 = vsyncpa [#allocation6], 1 }
 0x230   :  { %241 = vsyncpa [#allocation4], 1 }

</bundles_post_ra>
